<compile_context>
chip_gen: v5e
topology: v5e:2x2
jax: 0.10.0
libtpu: 0.0.40
codegen_flags: <defaults>
</compile_context>

<pallas_src>
import jax
import jax.numpy as jnp
from jax.experimental import pallas as pl
from jax.experimental.pallas import tpu as pltpu

TEMPERATURE = 0.07
EPS = 1e-12  # F.normalize eps


def _lse_kernel(q_ref, k_ref, out_ref, l_sc):
    """Row-wise log-sum-exp of (q_scaled @ k_norm.T), streamed over key tiles."""
    kv = pl.program_id(1)

    @pl.when(kv == 0)
    def _():
        l_sc[...] = jnp.zeros_like(l_sc)

    # (tq, tk) logit tile: contract the feature axis of both operands directly
    # (no transpose materialization); f32 accumulation on the MXU.
    s = jax.lax.dot_general(
        q_ref[...],
        k_ref[...],
        dimension_numbers=(((1,), (1,)), ((), ())),
        preferred_element_type=jnp.float32,
    )

    # No running max: inputs are L2-normalized with 1/T folded into the
    # queries, so |s| <= 1/T and exp(s) cannot overflow in f32.
    p = jnp.exp(s)

    # Deferred row-sum: fold the exp tile into (tq, fold) partial sums using
    # static 128-lane-group slices (pure VALU adds, no XLU in the inner loop).
    fold = l_sc.shape[1]
    acc = l_sc[...]
    for g in range(p.shape[1] // fold):
        acc = acc + p[:, g * fold:(g + 1) * fold]
    l_sc[...] = acc

    @pl.when(kv == pl.num_programs(1) - 1)
    def _():
        # Single cross-lane reduce + log, once per q-tile.
        out_ref[...] = jnp.log(jnp.sum(l_sc[...], axis=1, keepdims=True))


def _pick_tiles(B, D, itemsize):
    """VMEM-aware asymmetric tiling: maximize tq (key reuse), keep tk moderate."""
    budget = 40 * 1024 * 1024  # headroom under the 64 MiB limit / v7x VMEM

    def candidates(cands):
        out = [t for t in cands if t <= B and B % t == 0]
        return out or [B]

    tq_cands = candidates((2048, 1024, 512, 256, 128, 64, 32, 16, 8))
    tk_cands = candidates((512, 256, 128, 64, 32, 16, 8))

    def fits(tq, tk):
        q_bytes = 2 * tq * D * itemsize     # double-buffered query tile
        k_bytes = 2 * tk * D * itemsize     # double-buffered key tile
        scr_bytes = tq * 128 * 4            # l_sc partial-sum scratch (upper bound)
        out_bytes = 2 * tq * 4              # double-buffered (tq, 1) output
        return q_bytes + k_bytes + scr_bytes + out_bytes <= budget

    tq, tk = tq_cands[-1], tk_cands[-1]
    found = False
    for cand_q in tq_cands:                 # largest tq first: keys re-read B/tq times
        for cand_k in tk_cands:
            if fits(cand_q, cand_k):
                tq, tk = cand_q, cand_k
                found = True
                break
        if found:
            break
    # TODO(synk): for very large D the un-tiled feature axis can still exceed
    # v7x's 64 MiB VMEM; a third innermost "arbitrary" D grid axis with an f32
    # (tq, tk) logit accumulator would be needed there.

    # Keep >= 2 query blocks when possible so the "parallel" query axis shards
    # across both TensorCores on v7x (essentially free on single-TC v5e/v6e).
    if B // tq < 2:
        for cand_q in tq_cands:
            if cand_q <= B // 2 and fits(cand_q, tk):
                tq = cand_q
                break
    return tq, tk


def contrastive_loss(queries, keys, temperature=TEMPERATURE, matmul_dtype=None):
    """queries, keys: [B, D]. Scalar f32 InfoNCE loss (labels = arange(B))."""
    B, D = queries.shape
    assert keys.shape == (B, D)
    inv_temp = 1.0 / temperature
    # The kernel omits the online running max because logits are bounded by
    # 1/temperature after normalization; guard that assumption.
    assert inv_temp < 80.0, "temperature too small for the static-max logsumexp"

    # --- O(B*D) preprocessing, one fused XLA pass (hoisted out of the kernel)
    q32 = queries.astype(jnp.float32)
    k32 = keys.astype(jnp.float32)
    # x / max(||x||, eps) == x * rsqrt(max(sum(x^2), eps^2))
    qn = q32 * jax.lax.rsqrt(
        jnp.maximum(jnp.sum(q32 * q32, axis=1, keepdims=True), EPS * EPS))
    kn = k32 * jax.lax.rsqrt(
        jnp.maximum(jnp.sum(k32 * k32, axis=1, keepdims=True), EPS * EPS))

    # Diagonal (label) logits in f32, wrapper-side: removes the q-aligned key
    # input and its double-buffered (tq, D) VMEM footprint.
    diag = jnp.sum(qn * kn, axis=1) * inv_temp

    # MXU operand dtype.  Pass matmul_dtype=jnp.bfloat16 on v6e/v7x when
    # callers hand in f32 (f32 MXU accumulation keeps the loss accurate).
    mm_dtype = jnp.dtype(matmul_dtype) if matmul_dtype is not None else queries.dtype
    qs = (qn * inv_temp).astype(mm_dtype)   # fold 1/T: B*D multiply, not B*B
    ks = kn.astype(mm_dtype)

    tq, tk = _pick_tiles(B, D, jnp.dtype(mm_dtype).itemsize)
    num_q, num_k = B // tq, B // tk
    fold = 128 if tk % 128 == 0 else tk

    lse = pl.pallas_call(
        _lse_kernel,
        out_shape=jax.ShapeDtypeStruct((B, 1), jnp.float32),
        grid_spec=pltpu.PrefetchScalarGridSpec(
            num_scalar_prefetch=0,
            grid=(num_q, num_k),
            in_specs=[
                # normalized, 1/T-scaled query tile, indexed by the q axis
                pl.BlockSpec((tq, D), lambda qi, kv: (qi, 0)),
                # streamed pre-normalized key tile, indexed by the reduction axis
                pl.BlockSpec((tk, D), lambda qi, kv: (kv, 0)),
            ],
            out_specs=pl.BlockSpec((tq, 1), lambda qi, kv: (qi, 0)),
            scratch_shapes=[pltpu.VMEM((tq, fold), jnp.float32)],
        ),
        compiler_params=pltpu.CompilerParams(
            dimension_semantics=("parallel", "arbitrary"),
            vmem_limit_bytes=64 * 1024 * 1024,
        ),
    )(qs, ks)

    # cross_entropy(sim, arange(B)) with mean reduction == mean(lse - diag).
    return jnp.mean(lse[:, 0] - diag)


def _reference_loss(queries, keys, temperature=TEMPERATURE):
    """Pure-JAX reference mirroring the PyTorch forward."""
    qn = queries / jnp.maximum(jnp.linalg.norm(queries, axis=1, keepdims=True), EPS)
    kn = keys / jnp.maximum(jnp.linalg.norm(keys, axis=1, keepdims=True), EPS)
    sim = (qn @ kn.T) / temperature
    n = sim.shape[0]
    logp = jax.nn.log_softmax(sim, axis=1)
    return -jnp.mean(logp[jnp.arange(n), jnp.arange(n)])


if __name__ == "__main__":
    key = jax.random.PRNGKey(0)
    kq, kk = jax.random.split(key)
    B, D = 8, 32  # small batch of text/video embeddings
    queries = jax.random.normal(kq, (B, D), dtype=jnp.float32)
    keys_arr = jax.random.normal(kk, (B, D), dtype=jnp.float32)

    loss = jax.jit(contrastive_loss)(queries, keys_arr)
    jax.block_until_ready(loss)

    ref = _reference_loss(queries, keys_arr)
    assert jnp.allclose(loss, ref, atol=1e-4, rtol=1e-4), (loss, ref)

    print("KERNEL_OK")
</pallas_src>

<mosaic_0001>
module attributes {stable_mosaic.version = 11 : i64} {
  func.func @_lse_kernel(%arg0: i32, %arg1: i32, %arg2: memref<8x32xf32, #tpu.memory_space<vmem>>, %arg3: memref<8x32xf32, #tpu.memory_space<vmem>>, %arg4: memref<8x1xf32, #tpu.memory_space<vmem>>, %arg5: memref<8x8xf32, #tpu.memory_space<vmem>>) attributes {dimension_semantics = [#tpu.dimension_semantics<parallel>, #tpu.dimension_semantics<arbitrary>], iteration_bounds = array<i64: 1, 1>, scalar_prefetch = 0 : i64, scratch_operands = 1 : i64, tpu.core_type = #tpu.core_type<tc>, window_params = [{transform_indices = @transform_0, window_bounds = array<i64: 8, 32>}, {transform_indices = @transform_1, window_bounds = array<i64: 8, 32>}, {transform_indices = @transform_2, window_bounds = array<i64: 8, 1>}]} {
    %c0_i32 = arith.constant 0 : i32
    %0 = arith.cmpi eq, %arg1, %c0_i32 : i32
    %1 = arith.extui %0 : i1 to i32
    %c0_i32_0 = arith.constant 0 : i32
    %2 = arith.cmpi ne, %1, %c0_i32_0 : i32
    scf.if %2 {
      %cst_10 = arith.constant 0.000000e+00 : f32
      %13 = vector.broadcast %cst_10 : f32 to vector<8x8xf32>
      %c0_11 = arith.constant 0 : index
      %c0_12 = arith.constant 0 : index
      %14 = vector.load %arg5[%c0_11, %c0_12] : memref<8x8xf32, #tpu.memory_space<vmem>>, vector<8x8xf32>
      tpu.vector_store %arg5[%c0_11, %c0_12], %13 {strides = array<i32>} : memref<8x8xf32, #tpu.memory_space<vmem>>, vector<8x8xf32>,
    } else {
    }
    %c0 = arith.constant 0 : index
    %c0_1 = arith.constant 0 : index
    %3 = vector.load %arg2[%c0, %c0_1] : memref<8x32xf32, #tpu.memory_space<vmem>>, vector<8x32xf32>
    %c0_2 = arith.constant 0 : index
    %c0_3 = arith.constant 0 : index
    %4 = vector.load %arg3[%c0_2, %c0_3] : memref<8x32xf32, #tpu.memory_space<vmem>>, vector<8x32xf32>
    %cst = arith.constant dense<0.000000e+00> : vector<8x8xf32>
    %5 = tpu.matmul %3, %4, %cst {dimension_numbers = #tpu.dot_dimension_numbers<[1], [1], [0], [0], [0, 0, 1, 0], [], []>} : vector<8x32xf32>, vector<8x32xf32>, vector<8x8xf32> -> vector<8x8xf32>
    %6 = math.exp %5 : vector<8x8xf32>
    %c0_4 = arith.constant 0 : index
    %c0_5 = arith.constant 0 : index
    %7 = vector.load %arg5[%c0_4, %c0_5] : memref<8x8xf32, #tpu.memory_space<vmem>>, vector<8x8xf32>
    %8 = arith.addf %7, %6 : vector<8x8xf32>
    %c0_6 = arith.constant 0 : index
    %c0_7 = arith.constant 0 : index
    %9 = vector.load %arg5[%c0_6, %c0_7] : memref<8x8xf32, #tpu.memory_space<vmem>>, vector<8x8xf32>
    tpu.vector_store %arg5[%c0_6, %c0_7], %8 {strides = array<i32>} : memref<8x8xf32, #tpu.memory_space<vmem>>, vector<8x8xf32>,
    %c0_i32_8 = arith.constant 0 : i32
    %10 = arith.cmpi eq, %arg1, %c0_i32_8 : i32
    %11 = arith.extui %10 : i1 to i32
    %c0_i32_9 = arith.constant 0 : i32
    %12 = arith.cmpi ne, %11, %c0_i32_9 : i32
    scf.if %12 {
      %c0_10 = arith.constant 0 : index
      %c0_11 = arith.constant 0 : index
      %13 = vector.load %arg5[%c0_10, %c0_11] : memref<8x8xf32, #tpu.memory_space<vmem>>, vector<8x8xf32>
      %cst_12 = arith.constant dense<0.000000e+00> : vector<8xf32>
      %14 = vector.multi_reduction <add>, %13, %cst_12 [1] : vector<8x8xf32> to vector<8xf32>
      %15 = vector.shape_cast %14 : vector<8xf32> to vector<8x1xf32>
      %16 = math.log %15 : vector<8x1xf32>
      %c0_13 = arith.constant 0 : index
      %c0_14 = arith.constant 0 : index
      %17 = vector.load %arg4[%c0_13, %c0_14] : memref<8x1xf32, #tpu.memory_space<vmem>>, vector<8x1xf32>
      tpu.vector_store %arg4[%c0_13, %c0_14], %16 {strides = array<i32>} : memref<8x1xf32, #tpu.memory_space<vmem>>, vector<8x1xf32>,
    } else {
    }
    return
  }
  func.func @transform_0(%arg0: i32, %arg1: i32) -> (i32, i32) {
    %c0_i32 = arith.constant 0 : i32
    %c0_i32_0 = arith.constant 0 : i32
    return %arg0, %c0_i32 : i32, i32
  }
  func.func @transform_1(%arg0: i32, %arg1: i32) -> (i32, i32) {
    %c0_i32 = arith.constant 0 : i32
    %c0_i32_0 = arith.constant 0 : i32
    return %arg1, %c0_i32 : i32, i32
  }
  func.func @transform_2(%arg0: i32, %arg1: i32) -> (i32, i32) {
    %c0_i32 = arith.constant 0 : i32
    %c0_i32_0 = arith.constant 0 : i32
    return %arg0, %c0_i32 : i32, i32
  }
}

</mosaic_0001>

<bundles_post_ra>
// kernel: contrastive_loss.1
= control target key start
LH: loop header
LB: loop body
LE: loop exit
PB: predicated region body
PF: predicated region fallthrough
CT: control target
= control target key end

     0   :  { %vm19_vm0 = vcmask 261120   ;;  %vm15_vm1 = vcmask 64512   ;;  %v74_v2 = vmov 0.0   ;;  %vm61_vm2 = vcmask 7168   ;;  %s99_s1 = inlined_call_operand.vmem [shape: f32[8,32], index: 1, kind: input, shape index: {}]   ;;  %s100_s0 = inlined_call_operand.vmem [shape: f32[8,32], index: 0, kind: input, shape index: {}]   ;;  %s101_s2 = inlined_call_operand.vmem [shape: f32[8,1], index: 2, kind: output, shape index: {}]  }
   0x1   :  { %v18_v0 = vld [vmem:[%s99_s1] sm:$0xff]  ;;  %16 = vst.msk [vmem:[#allocation2] sm:$0xff] %vm15_vm1, %v74_v2 }
   0x2   :  { %67 = vmatpush.xpose.msk.msra.mxu0 %vm19_vm0, %v18_v0  ;;  %v17_v1 = vld [vmem:[%s100_s0] sm:$0xff] }
   0x5   :  { %68 = vmatmul.msk.f32.vlgmr.msra.gmra.mxu0 %vm19_vm0, %v17_v1 }
   0x8   :  { %v48_v5 = vld [vmem:[#allocation2] sm:$0xff] }
  0x82   :  { %v43_v3 = vpop.f32.mrf.mxu0 }
  0x83   :  { %v46_v4 = vmul.f32 1.442695, %v43_v3 }
  0x85   :  { %70 = vpow2.f32 %v46_v4 }
  0x8b   :  { %v71_v6 = vpop.eup %70 }
  0x8c   :  { %v49_v7 = vadd.f32 %v71_v6, %v48_v5 }
  0x8e   :  { %51 = vst.msk [vmem:[#allocation2] sm:$0xff] %vm15_vm1, %v49_v7 }
  0x95   :  { %v55_v8 = vld [vmem:[#allocation2] sm:$0xff] }
  0x96   :  { %v56_v9 = vsel %vm15_vm1, %v55_v8, 0.0 }
  0x97   :  { %57 = vadd.xlane.f32.xlu0 %v56_v9 }
 0x10a   :  { %v58_v10 = vpop.xlane.xlu0 %57 }
 0x10b   :  { %72 = vlog2.f32 %v58_v10 }
 0x111   :  { %v73_v11 = vpop.eup %72 }
 0x112   :  { %v60_v12 = vmul.f32 0.6931472, %v73_v11 }
 0x114   :  { %62 = vst.msk [vmem:[%s101_s2] sm:$0xff] %vm61_vm2, %v60_v12 }

</bundles_post_ra>
